<compile_context>
chip_gen: v7x
topology: tpu7x:2x2x1
jax: 0.10.0
libtpu: 0.0.40
codegen_flags: <defaults>
</compile_context>

<pallas_src>
import functools

import jax
import jax.numpy as jnp
from jax.experimental import pallas as pl
from jax.experimental.pallas import tpu as pltpu

IGNORE_INDEX = 255


def _round_up(x, m):
    return ((x + m - 1) // m) * m


def _ce_kernel(main_ref, aux_ref, tgt_ref,
               out_main_ref, out_aux_ref, out_cnt_ref, *, hw):
    """Accumulates per-lane masked NLL partial sums (main & aux) and valid-pixel counts.

    Block shapes:
      main_ref/aux_ref : (1, C, TILE)  logits for one sample, one pixel tile
      tgt_ref          : (1, 1, TILE)  int32 targets
      out_*_ref        : (1, 1, TILE)  f32 per-lane accumulators (resident across tiles)
    """
    t = pl.program_id(1)

    @pl.when(t == 0)
    def _():
        out_main_ref[...] = jnp.zeros_like(out_main_ref)
        out_aux_ref[...] = jnp.zeros_like(out_aux_ref)
        out_cnt_ref[...] = jnp.zeros_like(out_cnt_ref)

    _, c, tile = main_ref.shape
    tgt = tgt_ref[...]                                         # (1, 1, TILE) int32

    # Mask: real pixels only (ignore_index + ragged last tile beyond HW).
    col = jax.lax.broadcasted_iota(jnp.int32, (1, 1, tile), 2) + t * tile
    valid = (tgt != IGNORE_INDEX) & (col < hw)                 # (1, 1, TILE)

    # One-hot of the target along the class (second-minor) axis.
    row = jax.lax.broadcasted_iota(jnp.int32, (1, c, tile), 1)
    onehot = row == tgt                                        # (1, C, TILE)

    def masked_nll(x):
        x = x.astype(jnp.float32)                              # (1, C, TILE)
        m = jnp.max(x, axis=1, keepdims=True)                  # (1, 1, TILE)
        lse = jnp.log(jnp.sum(jnp.exp(x - m), axis=1, keepdims=True)) + m
        picked = jnp.sum(jnp.where(onehot, x, 0.0), axis=1, keepdims=True)
        return jnp.where(valid, lse - picked, 0.0)             # (1, 1, TILE)

    out_main_ref[...] += masked_nll(main_ref[...])
    out_aux_ref[...] += masked_nll(aux_ref[...])
    out_cnt_ref[...] += valid.astype(jnp.float32)


def _masked_ce_sums(main, aux, tgt, *, tile_hw=8192):
    """main/aux: (N, C, HW) logits, tgt: (N, 1, HW) int32.

    Returns three (N, 1, TILE) f32 arrays of per-lane partial sums:
      (nll_main, nll_aux, valid_count).
    """
    N, C, HW = main.shape
    tile_hw = min(tile_hw, _round_up(HW, 128))
    num_tiles = pl.cdiv(HW, tile_hw)

    kernel = functools.partial(_ce_kernel, hw=HW)
    out_sds = jax.ShapeDtypeStruct((N, 1, tile_hw), jnp.float32)

    return pl.pallas_call(
        kernel,
        out_shape=[out_sds, out_sds, out_sds],
        grid_spec=pltpu.PrefetchScalarGridSpec(
            num_scalar_prefetch=0,
            grid=(N, num_tiles),
            in_specs=[
                pl.BlockSpec((1, C, tile_hw), lambda n, t: (n, 0, t)),
                pl.BlockSpec((1, C, tile_hw), lambda n, t: (n, 0, t)),
                pl.BlockSpec((1, 1, tile_hw), lambda n, t: (n, 0, t)),
            ],
            out_specs=[
                pl.BlockSpec((1, 1, tile_hw), lambda n, t: (n, 0, 0)),
                pl.BlockSpec((1, 1, tile_hw), lambda n, t: (n, 0, 0)),
                pl.BlockSpec((1, 1, tile_hw), lambda n, t: (n, 0, 0)),
            ],
        ),
        compiler_params=pltpu.CompilerParams(
            dimension_semantics=("parallel", "arbitrary")),
    )(main, aux, tgt)


def criterion_forward(preds, target, aux, aux_weight=0.4, tile_hw=8192):
    """Matches Criterion(aux_weight).forward(preds, target, aux) with use_weight=False."""
    N, C, H, W = preds.shape
    assert target.shape == (N, H, W)
    HW = H * W

    # Plain reshapes only -- no transposes, no padding copies.
    main_f = preds.reshape(N, C, HW)
    tgt_f = target.reshape(N, 1, HW).astype(jnp.int32)
    if aux_weight > 0:
        assert aux.shape == preds.shape
        aux_f = aux.reshape(N, C, HW)
    else:
        aux_f = main_f  # aux term unused below

    s_main, s_aux, cnt = _masked_ce_sums(main_f, aux_f, tgt_f, tile_hw=tile_hw)

    total_cnt = jnp.sum(cnt)
    loss_main = jnp.sum(s_main) / total_cnt
    if aux_weight > 0:
        loss_aux = jnp.sum(s_aux) / total_cnt
        return loss_main + aux_weight * loss_aux
    return loss_main


if __name__ == "__main__":
    key = jax.random.PRNGKey(0)
    k1, k2, k3, k4 = jax.random.split(key, 4)

    N, C, H, W = 2, 19, 16, 16
    aux_weight = 0.4

    preds = jax.random.normal(k1, (N, C, H, W), jnp.float32)
    aux = jax.random.normal(k2, (N, C, H, W), jnp.float32)
    target = jax.random.randint(k3, (N, H, W), 0, C).astype(jnp.int32)
    # sprinkle some ignored pixels
    ignore_mask = jax.random.uniform(k4, (N, H, W)) < 0.1
    target = jnp.where(ignore_mask, IGNORE_INDEX, target)

    loss = criterion_forward(preds, target, aux, aux_weight)
    loss = jax.block_until_ready(loss)

    # Pure-JAX reference check (same semantics as nn.CrossEntropyLoss w/ ignore_index).
    def ref_ce(logits, tgt):
        x = jnp.transpose(logits, (0, 2, 3, 1)).reshape(-1, logits.shape[1])
        t = tgt.reshape(-1)
        valid = t != IGNORE_INDEX
        logp = jax.nn.log_softmax(x, axis=-1)
        picked = jnp.take_along_axis(
            logp, jnp.where(valid, t, 0)[:, None], axis=-1)[:, 0]
        return jnp.sum(jnp.where(valid, -picked, 0.0)) / jnp.sum(valid)

    ref = ref_ce(preds, target) + aux_weight * ref_ce(aux, target)
    assert jnp.allclose(loss, ref, rtol=1e-4, atol=1e-5), (float(loss), float(ref))

    print("KERNEL_OK")
</pallas_src>

<mosaic_0001>
module attributes {stable_mosaic.version = 11 : i64} {
  func.func @_ce_kernel(%arg0: i32, %arg1: i32, %arg2: memref<1x19x256xf32, #tpu.memory_space<vmem>>, %arg3: memref<1x19x256xf32, #tpu.memory_space<vmem>>, %arg4: memref<1x1x256xi32, #tpu.memory_space<vmem>>, %arg5: memref<1x1x256xf32, #tpu.memory_space<vmem>>, %arg6: memref<1x1x256xf32, #tpu.memory_space<vmem>>, %arg7: memref<1x1x256xf32, #tpu.memory_space<vmem>>) attributes {dimension_semantics = [#tpu.dimension_semantics<parallel>, #tpu.dimension_semantics<arbitrary>], iteration_bounds = array<i64: 2, 1>, scalar_prefetch = 0 : i64, scratch_operands = 0 : i64, tpu.core_type = #tpu.core_type<tc>, window_params = [{transform_indices = @transform_0, window_bounds = array<i64: 1, 19, 256>}, {transform_indices = @transform_1, window_bounds = array<i64: 1, 19, 256>}, {transform_indices = @transform_2, window_bounds = array<i64: 1, 1, 256>}, {transform_indices = @transform_3, window_bounds = array<i64: 1, 1, 256>}, {transform_indices = @transform_4, window_bounds = array<i64: 1, 1, 256>}, {transform_indices = @transform_5, window_bounds = array<i64: 1, 1, 256>}]} {
    %c0_i32 = arith.constant 0 : i32
    %0 = arith.cmpi eq, %arg1, %c0_i32 : i32
    %1 = arith.extui %0 : i1 to i32
    %c0_i32_0 = arith.constant 0 : i32
    %2 = arith.cmpi ne, %1, %c0_i32_0 : i32
    scf.if %2 {
      %cst_37 = arith.constant 0.000000e+00 : f32
      %61 = vector.broadcast %cst_37 : f32 to vector<1x1x256xf32>
      %c0_38 = arith.constant 0 : index
      %c0_39 = arith.constant 0 : index
      %c0_40 = arith.constant 0 : index
      %62 = vector.load %arg5[%c0_38, %c0_39, %c0_40] : memref<1x1x256xf32, #tpu.memory_space<vmem>>, vector<1x1x256xf32>
      tpu.vector_store %arg5[%c0_38, %c0_39, %c0_40], %61 {strides = array<i32>} : memref<1x1x256xf32, #tpu.memory_space<vmem>>, vector<1x1x256xf32>,
      %cst_41 = arith.constant 0.000000e+00 : f32
      %63 = vector.broadcast %cst_41 : f32 to vector<1x1x256xf32>
      %c0_42 = arith.constant 0 : index
      %c0_43 = arith.constant 0 : index
      %c0_44 = arith.constant 0 : index
      %64 = vector.load %arg6[%c0_42, %c0_43, %c0_44] : memref<1x1x256xf32, #tpu.memory_space<vmem>>, vector<1x1x256xf32>
      tpu.vector_store %arg6[%c0_42, %c0_43, %c0_44], %63 {strides = array<i32>} : memref<1x1x256xf32, #tpu.memory_space<vmem>>, vector<1x1x256xf32>,
      %cst_45 = arith.constant 0.000000e+00 : f32
      %65 = vector.broadcast %cst_45 : f32 to vector<1x1x256xf32>
      %c0_46 = arith.constant 0 : index
      %c0_47 = arith.constant 0 : index
      %c0_48 = arith.constant 0 : index
      %66 = vector.load %arg7[%c0_46, %c0_47, %c0_48] : memref<1x1x256xf32, #tpu.memory_space<vmem>>, vector<1x1x256xf32>
      tpu.vector_store %arg7[%c0_46, %c0_47, %c0_48], %65 {strides = array<i32>} : memref<1x1x256xf32, #tpu.memory_space<vmem>>, vector<1x1x256xf32>,
    } else {
    }
    %c0 = arith.constant 0 : index
    %c0_1 = arith.constant 0 : index
    %c0_2 = arith.constant 0 : index
    %3 = vector.load %arg4[%c0, %c0_1, %c0_2] : memref<1x1x256xi32, #tpu.memory_space<vmem>>, vector<1x1x256xi32>
    %4 = tpu.iota {dimensions = array<i32: 2>} : vector<1x1x256xi32>
    %c256_i32 = arith.constant 256 : i32
    %5 = arith.muli %arg1, %c256_i32 : i32
    %6 = vector.broadcast %5 : i32 to vector<1x1x256xi32>
    %7 = arith.addi %4, %6 : vector<1x1x256xi32>
    %c255_i32 = arith.constant 255 : i32
    %8 = vector.broadcast %c255_i32 : i32 to vector<1x1x256xi32>
    %9 = arith.cmpi ne, %3, %8 : vector<1x1x256xi32>
    %c256_i32_3 = arith.constant 256 : i32
    %10 = vector.broadcast %c256_i32_3 : i32 to vector<1x1x256xi32>
    %11 = arith.cmpi slt, %7, %10 : vector<1x1x256xi32>
    %12 = arith.andi %9, %11 : vector<1x1x256xi1>
    %13 = tpu.iota {dimensions = array<i32: 1>} : vector<1x19x256xi32>
    %14 = vector.broadcast %3 : vector<1x1x256xi32> to vector<1x19x256xi32>
    %15 = arith.cmpi eq, %13, %14 : vector<1x19x256xi32>
    %c0_4 = arith.constant 0 : index
    %c0_5 = arith.constant 0 : index
    %c0_6 = arith.constant 0 : index
    %16 = vector.load %arg5[%c0_4, %c0_5, %c0_6] : memref<1x1x256xf32, #tpu.memory_space<vmem>>, vector<1x1x256xf32>
    %c0_7 = arith.constant 0 : index
    %c0_8 = arith.constant 0 : index
    %c0_9 = arith.constant 0 : index
    %17 = vector.load %arg2[%c0_7, %c0_8, %c0_9] : memref<1x19x256xf32, #tpu.memory_space<vmem>>, vector<1x19x256xf32>
    %cst = arith.constant dense<0xFF800000> : vector<1x256xf32>
    %18 = vector.multi_reduction <maximumf>, %17, %cst [1] : vector<1x19x256xf32> to vector<1x256xf32>
    %19 = vector.shape_cast %18 : vector<1x256xf32> to vector<1x1x256xf32>
    %20 = vector.broadcast %19 : vector<1x1x256xf32> to vector<1x19x256xf32>
    %21 = arith.subf %17, %20 : vector<1x19x256xf32>
    %22 = math.exp %21 : vector<1x19x256xf32>
    %cst_10 = arith.constant dense<0.000000e+00> : vector<1x256xf32>
    %23 = vector.multi_reduction <add>, %22, %cst_10 [1] : vector<1x19x256xf32> to vector<1x256xf32>
    %24 = vector.shape_cast %23 : vector<1x256xf32> to vector<1x1x256xf32>
    %25 = math.log %24 : vector<1x1x256xf32>
    %26 = arith.addf %25, %19 : vector<1x1x256xf32>
    %cst_11 = arith.constant 0.000000e+00 : f32
    %27 = vector.broadcast %cst_11 : f32 to vector<1x19x256xf32>
    %28 = arith.select %15, %17, %27 : vector<1x19x256xi1>, vector<1x19x256xf32>
    %cst_12 = arith.constant dense<0.000000e+00> : vector<1x256xf32>
    %29 = vector.multi_reduction <add>, %28, %cst_12 [1] : vector<1x19x256xf32> to vector<1x256xf32>
    %30 = vector.shape_cast %29 : vector<1x256xf32> to vector<1x1x256xf32>
    %31 = arith.subf %26, %30 : vector<1x1x256xf32>
    %cst_13 = arith.constant 0.000000e+00 : f32
    %32 = vector.broadcast %cst_13 : f32 to vector<1x1x256xf32>
    %33 = arith.select %12, %31, %32 : vector<1x1x256xi1>, vector<1x1x256xf32>
    %34 = arith.addf %16, %33 : vector<1x1x256xf32>
    %c0_14 = arith.constant 0 : index
    %c0_15 = arith.constant 0 : index
    %c0_16 = arith.constant 0 : index
    %35 = vector.load %arg5[%c0_14, %c0_15, %c0_16] : memref<1x1x256xf32, #tpu.memory_space<vmem>>, vector<1x1x256xf32>
    tpu.vector_store %arg5[%c0_14, %c0_15, %c0_16], %34 {strides = array<i32>} : memref<1x1x256xf32, #tpu.memory_space<vmem>>, vector<1x1x256xf32>,
    %c0_17 = arith.constant 0 : index
    %c0_18 = arith.constant 0 : index
    %c0_19 = arith.constant 0 : index
    %36 = vector.load %arg6[%c0_17, %c0_18, %c0_19] : memref<1x1x256xf32, #tpu.memory_space<vmem>>, vector<1x1x256xf32>
    %c0_20 = arith.constant 0 : index
    %c0_21 = arith.constant 0 : index
    %c0_22 = arith.constant 0 : index
    %37 = vector.load %arg3[%c0_20, %c0_21, %c0_22] : memref<1x19x256xf32, #tpu.memory_space<vmem>>, vector<1x19x256xf32>
    %cst_23 = arith.constant dense<0xFF800000> : vector<1x256xf32>
    %38 = vector.multi_reduction <maximumf>, %37, %cst_23 [1] : vector<1x19x256xf32> to vector<1x256xf32>
    %39 = vector.shape_cast %38 : vector<1x256xf32> to vector<1x1x256xf32>
    %40 = vector.broadcast %39 : vector<1x1x256xf32> to vector<1x19x256xf32>
    %41 = arith.subf %37, %40 : vector<1x19x256xf32>
    %42 = math.exp %41 : vector<1x19x256xf32>
    %cst_24 = arith.constant dense<0.000000e+00> : vector<1x256xf32>
    %43 = vector.multi_reduction <add>, %42, %cst_24 [1] : vector<1x19x256xf32> to vector<1x256xf32>
    %44 = vector.shape_cast %43 : vector<1x256xf32> to vector<1x1x256xf32>
    %45 = math.log %44 : vector<1x1x256xf32>
    %46 = arith.addf %45, %39 : vector<1x1x256xf32>
    %cst_25 = arith.constant 0.000000e+00 : f32
    %47 = vector.broadcast %cst_25 : f32 to vector<1x19x256xf32>
    %48 = arith.select %15, %37, %47 : vector<1x19x256xi1>, vector<1x19x256xf32>
    %cst_26 = arith.constant dense<0.000000e+00> : vector<1x256xf32>
    %49 = vector.multi_reduction <add>, %48, %cst_26 [1] : vector<1x19x256xf32> to vector<1x256xf32>
    %50 = vector.shape_cast %49 : vector<1x256xf32> to vector<1x1x256xf32>
    %51 = arith.subf %46, %50 : vector<1x1x256xf32>
    %cst_27 = arith.constant 0.000000e+00 : f32
    %52 = vector.broadcast %cst_27 : f32 to vector<1x1x256xf32>
    %53 = arith.select %12, %51, %52 : vector<1x1x256xi1>, vector<1x1x256xf32>
    %54 = arith.addf %36, %53 : vector<1x1x256xf32>
    %c0_28 = arith.constant 0 : index
    %c0_29 = arith.constant 0 : index
    %c0_30 = arith.constant 0 : index
    %55 = vector.load %arg6[%c0_28, %c0_29, %c0_30] : memref<1x1x256xf32, #tpu.memory_space<vmem>>, vector<1x1x256xf32>
    tpu.vector_store %arg6[%c0_28, %c0_29, %c0_30], %54 {strides = array<i32>} : memref<1x1x256xf32, #tpu.memory_space<vmem>>, vector<1x1x256xf32>,
    %c0_31 = arith.constant 0 : index
    %c0_32 = arith.constant 0 : index
    %c0_33 = arith.constant 0 : index
    %56 = vector.load %arg7[%c0_31, %c0_32, %c0_33] : memref<1x1x256xf32, #tpu.memory_space<vmem>>, vector<1x1x256xf32>
    %57 = arith.extui %12 : vector<1x1x256xi1> to vector<1x1x256xi32>
    %58 = arith.sitofp %57 : vector<1x1x256xi32> to vector<1x1x256xf32>
    %59 = arith.addf %56, %58 : vector<1x1x256xf32>
    %c0_34 = arith.constant 0 : index
    %c0_35 = arith.constant 0 : index
    %c0_36 = arith.constant 0 : index
    %60 = vector.load %arg7[%c0_34, %c0_35, %c0_36] : memref<1x1x256xf32, #tpu.memory_space<vmem>>, vector<1x1x256xf32>
    tpu.vector_store %arg7[%c0_34, %c0_35, %c0_36], %59 {strides = array<i32>} : memref<1x1x256xf32, #tpu.memory_space<vmem>>, vector<1x1x256xf32>,
    return
  }
  func.func @transform_0(%arg0: i32, %arg1: i32) -> (i32, i32, i32) {
    %c0_i32 = arith.constant 0 : i32
    %c0_i32_0 = arith.constant 0 : i32
    return %arg0, %c0_i32, %arg1 : i32, i32, i32
  }
  func.func @transform_1(%arg0: i32, %arg1: i32) -> (i32, i32, i32) {
    %c0_i32 = arith.constant 0 : i32
    %c0_i32_0 = arith.constant 0 : i32
    return %arg0, %c0_i32, %arg1 : i32, i32, i32
  }
  func.func @transform_2(%arg0: i32, %arg1: i32) -> (i32, i32, i32) {
    %c0_i32 = arith.constant 0 : i32
    %c0_i32_0 = arith.constant 0 : i32
    return %arg0, %c0_i32, %arg1 : i32, i32, i32
  }
  func.func @transform_3(%arg0: i32, %arg1: i32) -> (i32, i32, i32) {
    %c0_i32 = arith.constant 0 : i32
    %c0_i32_0 = arith.constant 0 : i32
    %c0_i32_1 = arith.constant 0 : i32
    return %arg0, %c0_i32, %c0_i32_0 : i32, i32, i32
  }
  func.func @transform_4(%arg0: i32, %arg1: i32) -> (i32, i32, i32) {
    %c0_i32 = arith.constant 0 : i32
    %c0_i32_0 = arith.constant 0 : i32
    %c0_i32_1 = arith.constant 0 : i32
    return %arg0, %c0_i32, %c0_i32_0 : i32, i32, i32
  }
  func.func @transform_5(%arg0: i32, %arg1: i32) -> (i32, i32, i32) {
    %c0_i32 = arith.constant 0 : i32
    %c0_i32_0 = arith.constant 0 : i32
    %c0_i32_1 = arith.constant 0 : i32
    return %arg0, %c0_i32, %c0_i32_0 : i32, i32, i32
  }
}

</mosaic_0001>

<bundles_post_ra>
// kernel: tpu_custom_call.1
= control target key start
LH: loop header
LB: loop body
LE: loop exit
PB: predicated region body
PF: predicated region fallthrough
CT: control target
= control target key end

     0   :  { %11 = vsyncpa [#allocation3], 0  ;;  %s1568_s0 = inlined_call_operand.vmem [shape: f32[2,19,256], index: 0, kind: input, shape index: {}]   ;;  %s1569_s1 = inlined_call_operand.vmem [shape: f32[2,19,256], index: 1, kind: input, shape index: {}]   ;;  %s1570_s2 = inlined_call_operand.vmem [shape: s32[2,1,256], index: 2, kind: input, shape index: {}]   ;;  %s1571_s3 = inlined_call_operand.hbm [shape: f32[2,1,256], index: 3, kind: output, shape index: {0}]   ;;  %s1572_s4 = inlined_call_operand.hbm [shape: f32[2,1,256], index: 4, kind: output, shape index: {1}]   ;;  %s1573_s5 = inlined_call_operand.hbm [shape: f32[2,1,256], index: 5, kind: output, shape index: {2}]  }
   0x1   :  { %13 = vsyncpa [#allocation3 + $0x1], 0 }
   0x2   :  { %14 = vsyncpa [#allocation5], 0 }
   0x3   :  { %16 = vsyncpa [#allocation5 + $0x1], 0  ;;  %s1158_s18 = smov 0   ;;  %s1160_s19 = smov 0  }
   0x4   :  { %s1162_s20 = smov 0   ;;  %s1164_s21 = smov 0  }
   0x5   :  { %s1166_s22 = smov 0   ;;  %s1168_s23 = smov 0  }
   0x6 LB: > { %s855_s24 = sadd.s32 4294967295, %s1120_s23   ;;  %s1574_s25 = sadd.s32 4294967294, %s1120_s23   ;;  %s1120_s23 = sphi %s1168_s23, %s22_s23   ;;  %s1116_s22 = sphi %s1166_s22, %s1586_s22   ;;  %s1112_s21 = sphi %s1164_s21, %s1585_s21   ;;  %s1108_s20 = sphi %s1162_s20, %s1584_s20   ;;  %s1104_s19 = sphi %s1160_s19, %s1583_s19   ;;  %s1100_s18 = sphi %s1158_s18, %s1582_s18  }
   0x7   : > { %s34_s26 = sadd.s32 1, %s1116_s22  ;;  %s125_s27 = sadd.s32 1, %s1108_s20 }
   0x8   : > { %p36_p0 = scmp.ge.s32.totalorder %s34_s26, 2  ;;  %p135_p1 = scmp.ne.s32.totalorder %s1108_s20, %s1104_s19 }
   0x9   : > { %p136_p2 = scmp.eq.s32.totalorder %s855_s24, 1  ;;  %p141_p3 = scmp.ne.s32.totalorder %s1104_s19, %s1100_s18 }
   0xa   : > { %s1588_s26 = smov (%p36_p0, %s34_s26), 0  ;;  %p142_p5 = scmp.eq.s32.totalorder %s1574_s25, 1 }
   0xb   : > { %p1200_p4 = por %p136_p2, %p135_p1  ;;  %s122_s29 = ssub.s32 %s1116_s22, %s1588_s26 }
   0xc   : > { %p859_p6 = scmp.ge.s32.totalorder %s1120_s23, 1  ;;  %p123_p7 = scmp.eq.s32.totalorder %s122_s29, 0 }
   0xd   : > { %p1209_p8 = por %p142_p5, %p141_p3  ;;  %p250_p9 = scmp.lt.s32.totalorder %s1120_s23, 3 }
   0xe   : > { %s1215_s6 = scalar_select %p123_p7, %s1108_s20, %s125_s27  }
   0xf   : > { %p251_p10 = pnand %p859_p6, %p250_p9 }
  0x10   : > { %s292_s7 = sand.u32 (!%p251_p10), 1, %s1104_s19   ;;  %p310_p11 = scmp.lt.s32.totalorder (!%p251_p10), %s1112_s21, 1  ;;  %v342_v0 = vlaneseq (!%p251_p10)  ;;  %v1122_v2 = vmov (!%p251_p10), 0.0   ;;  %v1123_v3 = vmov (!%p251_p10), 1966171168   ;;  %vm404_vm1 = vcmask (!%p251_p10), 1042432  }
  0x11   : > { %254 = sbr.rel (%p251_p10) target bundleno = 170 (0xaa), region = 32  ;;  %s860_s8 = sshll.u32 (!%p251_p10), %s292_s7, 1  ;;  %v364_v4 = vunpack.c.l.s4 (!%p251_p10), %v1123_v3  ;;  %v1124_v22 = vmov (!%p251_p10), 1  }
  0x12   : > { %vm1221_vm0 = vcmp.lt.s32.totalorder (!%p251_p10), %v342_v0, 256  ;;  %s1228_s10 = scalar_lea.vmem (!%p251_p10), [#allocation4], %s860_s8  ;;  %s1234_s11 = scalar_lea.vmem (!%p251_p10), [#allocation2], %s860_s8  ;;  %v1272_v16 = vshrl.u32 (!%p251_p10), %v342_v0, 7  ;;  %v362_v23 = vcombine.low (!%p251_p10), %v1124_v22, %v1124_v22 }
  0x13   : > { %347 = vst.msk [vmem:[%s1228_s10] sm:$0x3] (!%p251_p10), %vm1221_vm0, %v1122_v2  ;;  %346 = vst.msk [vmem:[%s1234_s11] sm:$0x3] (!%p251_p10), %vm1221_vm0, %v1122_v2  ;;  %s1241_s13 = scalar_lea.vmem (!%p251_p10), [#allocation6], %s860_s8  ;;  %v365_v9 = vunpack.c.0.s8 (!%p251_p10), %v364_v4 }
  0x14   : > { %348 = vst.msk [vmem:[%s1241_s13] sm:$0x3] (!%p251_p10), %vm1221_vm0, %v1122_v2  ;;  %v1305_v50 = vadd.s32 (!%p251_p10), 8, %v1272_v16  ;;  %v1308_v54 = vadd.s32 (!%p251_p10), 16, %v1272_v16  ;;  %v385_v55 = vsub.s32 (!%p251_p10), 0, %v1272_v16 }
  0x15   : > { %v1283_v24 = vsub.s32 (!%p251_p10), %v365_v9, %v1272_v16 }
  0x17   : > { %v369_v36 = vrot.slane (!%p251_p10), %v362_v23, %v1283_v24 }
  0x18   : > { %s1226_s9 = scalar_select %p310_p11, %s1112_s21, 1 }
  0x19   : > { %v376_v45 = vrot.slane %v369_v36, %v1283_v24 }
  0x1a   : > { %s881_s12 = smul.u32 48, %s1226_s9  ;;  %s865_s8 = sshll.u32 %s1226_s9, 1 }
  0x1b   : > { %s336_s15 = scalar_lea.vmem %s1570_s2, %s865_s8  ;;  %vm377_vm3 = vcmp.ne.s32.totalorder %v376_v45, 0  ;;  %s1426_s9 = sshll.u32 %s1112_s21, 5 }
  0x1c   : > { %s317_s16 = scalar_lea.vmem %s1568_s0, %s881_s12  ;;  %s327_s29 = scalar_lea.vmem %s1569_s1, %s881_s12  ;;  %v349_v53 = vld [vmem:[%s336_s15] sm:$0x3] }
  0x1d   : > { %v1253_v5 = vld [vmem:[%s317_s16] sm:$0xff]  ;;  %v1257_v7 = vld [vmem:[%s317_s16 + $0x28] sm:$0x7]  ;;  %v1261_v10 = vld [vmem:[%s317_s16 + $0x10] sm:$0xff]  ;;  %vm357_vm2 = vcmp.ne.s32.totalorder %v349_v53, 255  ;;  %v1336_v22 = vrot.slane %v349_v53, %v385_v55  ;;  %s1445_s21 = sand.u32 1, %s855_s24  }
  0x1e   : > { %v1255_v6 = vld [vmem:[%s317_s16 + $0x20] sm:$0x7]  ;;  %v1259_v8 = vld [vmem:[%s317_s16 + $0x8] sm:$0xff]  ;;  %v1265_v12 = vld [vmem:[%s317_s16 + $0x18] sm:$0xff]  ;;  %v414_v14 = vsel %vm404_vm1, %v1257_v7, -inf  ;;  %s660_s16 = sshll.u32 %s1234_s11, 4  ;;  %s1437_s16 = int_to_ptr.vmem [resolvable:$true] %s660_s16 }
  0x1f   : > { %v405_v11 = vsel %vm404_vm1, %v1255_v6, -inf  ;;  %v1270_v15 = vld [vmem:[%s327_s29 + $0x20] sm:$0x7]  ;;  %v415_v17 = vmax.f32 %v1259_v8, %v414_v14  ;;  %v1277_v19 = vld [vmem:[%s327_s29 + $0x28] sm:$0x7]  ;;  %v1286_v26 = vld [vmem:[%s327_s29 + $0x10] sm:$0xff]  ;;  %vm391_vm5 = vcmp.eq.s32.totalorder %v1272_v16, %v1336_v22  ;;  %vm393_vm6 = vcmp.eq.s32.totalorder %v1305_v50, %v1336_v22 }
  0x20   : > { %v406_v13 = vmax.f32 %v1253_v5, %v405_v11  ;;  %v1275_v18 = vld [vmem:[%s327_s29] sm:$0xff]  ;;  %v1280_v21 = vld [vmem:[%s327_s29 + $0x8] sm:$0xff]  ;;  %v523_v27 = vsel %vm404_vm1, %v1270_v15, -inf  ;;  %v1290_v29 = vld [vmem:[%s327_s29 + $0x18] sm:$0xff]  ;;  %v532_v31 = vsel %vm404_vm1, %v1277_v19, -inf  ;;  %v389_v11 = vsub.s32 1, %v1272_v16  ;;  %s1435_s29 = scalar_lea.hbm %s1571_s3, %s1426_s9 }
  0x21   : > { %v416_v25 = vmax.f32 %v415_v17, %v1265_v12  ;;  %v524_v30 = vmax.f32 %v1275_v18, %v523_v27  ;;  %v533_v33 = vmax.f32 %v1280_v21, %v532_v31  ;;  %vm1332_vm4 = vmand %vm357_vm2, %vm377_vm3  ;;  %vm395_vm7 = vcmp.eq.s32.totalorder %v1308_v54, %v1336_v22  ;;  %s674_s8 = sshll.u32 %s1228_s10, 4  ;;  %s636_s12 = scalar_lea.sflag [#allocation3], %s292_s7  ;;  %s1484_s8 = int_to_ptr.vmem [resolvable:$true] %s674_s8 }
  0x22   : > { %v407_v20 = vmax.f32 %v406_v13, %v1261_v10  ;;  %s982_s14 = scalar_lea.vmem %s1437_s16, 32  ;;  %s1125_s15 = smov [#allocation2]  }
  0x23   : > { %v417_v32 = vrot.slane %v416_v25, 4  ;;  %v525_v35 = vmax.f32 %v524_v30, %v1286_v26  ;;  %v534_v38 = vmax.f32 %v533_v33, %v1290_v29  ;;  %p983_p12 = scmp.ne.s32.totalorder %s1437_s16, %s982_s14  ;;  %s986_s17 = sshll.u32 %s1125_s15, 4  ;;  %s987_s17 = int_to_ptr.vmem [resolvable:$false] %s986_s17 }
  0x24   : > { %v408_v28 = vrot.slane %v407_v20, 4  ;;  %s988_s27 = scalar_lea.vmem %s987_s17, 64  ;;  %p989_p1 = scmp.lt.s32.totalorder %s1437_s16, %s987_s17 }
  0x25   : > { %v418_v37 = vmax.f32 %v416_v25, %v417_v32  ;;  %v526_v40 = vrot.slane %v525_v35, 4  ;;  %v535_v42 = vrot.slane %v534_v38, 4  ;;  %p984_p13 = pnand %p983_p12, %p1200_p4  ;;  %p990_p2 = scmp.lt.s32.totalorder %s988_s27, %s982_s14 }
  0x26   : > { %v409_v34 = vmax.f32 %v407_v20, %v408_v28 }
  0x27   : > { %v419_v41 = vrot.slane %v418_v37, 2  ;;  %v527_v44 = vmax.f32 %v525_v35, %v526_v40  ;;  %v536_v47 = vmax.f32 %v534_v38, %v535_v42  ;;  %v630_v38 = vld [vmem:[%s1241_s13] sm:$0x3]  ;;  %p985_p0 = pneg %p984_p13  ;;  %p991_p3 = por %p990_p2, %p989_p1 }
  0x28   : > { %v410_v39 = vrot.slane %v409_v34, 2 }
  0x29   : > { %v420_v46 = vmax.f32 %v418_v37, %v419_v41  ;;  %v528_v49 = vrot.slane %v527_v44, 2  ;;  %v537_v52 = vrot.slane %v536_v47, 2  ;;  %v866_v37 = vsel %vm1332_vm4, 1.0, %v1122_v2  ;;  %p992_p5 = pnand %p991_p3, %p985_p0 }
  0x2a   : > { %v411_v43 = vmax.f32 %v409_v34, %v410_v39  ;;  %v390_v39 = vrot.slane %v349_v53, %v389_v11 }
  0x2b   : > { %v421_v51 = vrot.slane %v420_v46, 1  ;;  %v529_v57 = vmax.f32 %v527_v44, %v528_v49  ;;  %v538_v59 = vmax.f32 %v536_v47, %v537_v52  ;;  %v633_v44 = vadd.f32 %v866_v37, %v630_v38 }
  0x2c   : > { %v412_v48 = vrot.slane %v411_v43, 1  ;;  %vm392_vm8 = vcmp.eq.s32.totalorder %v1272_v16, %v390_v39  ;;  %vm394_vm9 = vcmp.eq.s32.totalorder %v1305_v50, %v390_v39  ;;  %v467_v47 = vsel %vm393_vm6, %v1261_v10, 0.0 }
  0x2d   : > { %v1313_v58 = vmax.f32 %v420_v46, %v421_v51  ;;  %v530_v63 = vrot.slane %v529_v57, 1  ;;  %v539_v9 = vrot.slane %v538_v59, 1  ;;  %634 = vst.msk [vmem:[%s1241_s13] sm:$0x3] %vm1221_vm0, %v633_v44  ;;  %v465_v46 = vsel %vm391_vm5, %v1253_v5, 0.0 }
  0x2e   : > { %v1311_v56 = vmax.f32 %v411_v43, %v412_v48  ;;  %vm396_vm10 = vcmp.eq.s32.totalorder %v1308_v54, %v390_v39  ;;  %v469_v48 = vsel %vm395_vm7, %v1255_v6, 0.0  ;;  %v471_v52 = vadd.f32 %v467_v47, %v465_v46 }
  0x2f   : > { %v424_v0 = vsub.f32 %v1259_v8, %v1313_v58  ;;  %v426_v3 = vsub.f32 %v1265_v12, %v1313_v58  ;;  %v428_v4 = vsub.f32 %v1257_v7, %v1313_v58  ;;  %v1328_v17 = vmax.f32 %v529_v57, %v530_v63 }
  0x30   : > { %v423_v60 = vsub.f32 %v1253_v5, %v1311_v56  ;;  %v425_v61 = vsub.f32 %v1261_v10, %v1311_v56  ;;  %v427_v62 = vsub.f32 %v1255_v6, %v1311_v56  ;;  %v1338_v27 = vmax.f32 %v538_v59, %v539_v9 }
  0x31   : > { %v431_v23 = vmul.f32 1.442695, %v424_v0  ;;  %v435_v25 = vmul.f32 1.442695, %v426_v3  ;;  %v541_v30 = vsub.f32 %v1275_v18, %v1328_v17  ;;  %v543_v31 = vsub.f32 %v1286_v26, %v1328_v17 }
  0x32   : > { %v429_v13 = vmul.f32 1.442695, %v423_v60  ;;  %v433_v14 = vmul.f32 1.442695, %v425_v61  ;;  %v437_v28 = vmul.f32 1.442695, %v427_v62  ;;  %v542_v33 = vsub.f32 %v1280_v21, %v1338_v27 }
  0x33   : > { %v439_v32 = vmul.f32 1.442695, %v428_v4  ;;  %v544_v34 = vsub.f32 %v1290_v29, %v1338_v27  ;;  %v545_v35 = vsub.f32 %v1270_v15, %v1328_v17  ;;  %v547_v36 = vmul.f32 1.442695, %v541_v30 }
  0x34   : > { %950 = vpow2.f32 %v429_v13  ;;  %v546_v40 = vsub.f32 %v1277_v19, %v1338_v27  ;;  %v549_v41 = vmul.f32 1.442695, %v542_v33  ;;  %v551_v42 = vmul.f32 1.442695, %v543_v31 }
  0x35   : > { %952 = vpow2.f32 %v431_v23  ;;  %v553_v43 = vmul.f32 1.442695, %v544_v34  ;;  %v555_v2 = vmul.f32 1.442695, %v545_v35  ;;  %v466_v5 = vsel %vm392_vm8, %v1259_v8, 0.0 }
  0x36   : > { %954 = vpow2.f32 %v433_v14  ;;  %v557_v45 = vmul.f32 1.442695, %v546_v40  ;;  %v468_v10 = vsel %vm394_vm9, %v1265_v12, 0.0  ;;  %v470_v55 = vsel %vm396_vm10, %v1257_v7, 0.0 }
  0x37   : > { %956 = vpow2.f32 %v435_v25  ;;  %v472_v6 = vsel %vm404_vm1, %v469_v48, 0.0  ;;  %v480_v61 = vadd.f32 %v468_v10, %v466_v5  ;;  %v481_v0 = vsel %vm404_vm1, %v470_v55, 0.0 }
  0x38   : > { %958 = vpow2.f32 %v437_v28  ;;  %v473_v8 = vadd.f32 %v472_v6, %v471_v52  ;;  %v583_v4 = vsel %vm391_vm5, %v1275_v18, 0.0  ;;  %v585_v7 = vsel %vm393_vm6, %v1286_v26, 0.0 }
  0x39   : > { %960 = vpow2.f32 %v439_v32  ;;  %v584_v14 = vsel %vm392_vm8, %v1280_v21, 0.0  ;;  %v586_v23 = vsel %vm394_vm9, %v1290_v29, 0.0  ;;  %v587_v18 = vsel %vm395_vm7, %v1270_v15, 0.0 }
  0x3a   : > { %962 = vpow2.f32 %v547_v36  ;;  %v482_v26 = vadd.f32 %v481_v0, %v480_v61  ;;  %v588_v30 = vsel %vm396_vm10, %v1277_v19, 0.0  ;;  %v589_v16 = vadd.f32 %v585_v7, %v583_v4 }
  0x3b   : > { %964 = vpow2.f32 %v549_v41  ;;  %v590_v29 = vsel %vm404_vm1, %v587_v18, 0.0  ;;  %v598_v50 = vadd.f32 %v586_v23, %v584_v14  ;;  %v599_v15 = vsel %vm404_vm1, %v588_v30, 0.0 }
  0x3c   : > { %966 = vpow2.f32 %v551_v42  ;;  %v474_v40 = vrot.slane %v473_v8, 4  ;;  %v483_v41 = vrot.slane %v482_v26, 4  ;;  %v591_v42 = vadd.f32 %v590_v29, %v589_v16 }
  0x3d   : > { %968 = vpow2.f32 %v553_v43 }
  0x3e   : > { %v951_v49 = vpop.eup %950  ;;  %970 = vpow2.f32 %v555_v2  ;;  %v600_v2 = vadd.f32 %v599_v15, %v598_v50  ;;  %v484_v10 = vadd.f32 %v483_v41, %v482_v26 }
  0x3f   : > { %v953_v51 = vpop.eup %952  ;;  %972 = vpow2.f32 %v557_v45 }
  0x40   : > { %v955_v53 = vpop.eup %954  ;;  %v485_v0 = vrot.slane %v484_v10, 2 }
  0x41   : > { %v957_v57 = vpop.eup %956  ;;  %v441_v59 = vadd.f32 %v955_v53, %v951_v49  ;;  %v475_v49 = vadd.f32 %v474_v40, %v473_v8  ;;  %v592_v53 = vrot.slane %v591_v42, 4 }
  0x42   : > { %v959_v60 = vpop.eup %958  ;;  %v450_v62 = vadd.f32 %v957_v57, %v953_v51  ;;  %v601_v57 = vrot.slane %v600_v2, 4 }
  0x43   : > { %v961_v63 = vpop.eup %960  ;;  %v442_v12 = vsel %vm404_vm1, %v959_v60, 0.0 }
  0x44   : > { %v963_v3 = vpop.eup %962  ;;  %v443_v9 = vadd.f32 %v442_v12, %v441_v59  ;;  %v451_v11 = vsel %vm404_vm1, %v961_v63, 0.0  ;;  %v602_v8 = vadd.f32 %v601_v57, %v600_v2  ;;  %v397_v2 = vld [vmem:[%s1234_s11] sm:$0x3] }
  0x45   : > { %v965_v13 = vpop.eup %964  ;;  %v452_v25 = vadd.f32 %v451_v11, %v450_v62  ;;  %v476_v62 = vrot.slane %v475_v49, 2 }
  0x46   : > { %v967_v28 = vpop.eup %966  ;;  %v444_v31 = vrot.slane %v443_v9, 4  ;;  %v603_v18 = vrot.slane %v602_v8, 2 }
  0x47   : > { %v969_v32 = vpop.eup %968  ;;  %v559_v21 = vadd.f32 %v967_v28, %v963_v3  ;;  %v453_v33 = vrot.slane %v452_v25, 4  ;;  %v593_v3 = vadd.f32 %v592_v53, %v591_v42 }
  0x48   : > { %v971_v34 = vpop.eup %970  ;;  %v568_v35 = vadd.f32 %v969_v32, %v965_v13  ;;  %v445_v36 = vadd.f32 %v444_v31, %v443_v9  ;;  %v477_v9 = vadd.f32 %v476_v62, %v475_v49  ;;  %v486_v13 = vadd.f32 %v485_v0, %v484_v10 }
  0x49   : > { %v973_v22 = vpop.eup %972  ;;  %v560_v37 = vsel %vm404_vm1, %v971_v34, 0.0  ;;  %v454_v38 = vadd.f32 %v453_v33, %v452_v25  ;;  %v594_v23 = vrot.slane %v593_v3, 2  ;;  %v604_v31 = vadd.f32 %v603_v18, %v602_v8 }
  0x4a   : > { %v561_v54 = vadd.f32 %v560_v37, %v559_v21  ;;  %v569_v19 = vsel %vm404_vm1, %v973_v22, 0.0  ;;  %v446_v39 = vrot.slane %v445_v36, 2  ;;  %v478_v25 = vrot.slane %v477_v9, 1 }
  0x4b   : > { %v570_v43 = vadd.f32 %v569_v19, %v568_v35  ;;  %v455_v44 = vrot.slane %v454_v38, 2  ;;  %v487_v28 = vrot.slane %v486_v13, 1  ;;  %v595_v26 = vadd.f32 %v594_v23, %v593_v3 }
  0x4c   : > { %v562_v45 = vrot.slane %v561_v54, 4  ;;  %v447_v46 = vadd.f32 %v446_v39, %v445_v36  ;;  %v479_v21 = vadd.f32 %v478_v25, %v477_v9  ;;  %v605_v35 = vrot.slane %v604_v31, 1 }
  0x4d   : > { %v571_v47 = vrot.slane %v570_v43, 4  ;;  %v456_v48 = vadd.f32 %v455_v44, %v454_v38  ;;  %v488_v34 = vadd.f32 %v487_v28, %v486_v13  ;;  %v596_v29 = vrot.slane %v595_v26, 1 }
  0x4e   : > { %v563_v51 = vadd.f32 %v562_v45, %v561_v54  ;;  %v448_v5 = vrot.slane %v447_v46, 1  ;;  %v606_v39 = vadd.f32 %v605_v35, %v604_v31 }
  0x4f   : > { %v572_v52 = vadd.f32 %v571_v47, %v570_v43  ;;  %v457_v55 = vrot.slane %v456_v48, 1  ;;  %v597_v54 = vadd.f32 %v596_v29, %v595_v26 }
  0x50   : > { %v564_v6 = vrot.slane %v563_v51, 2  ;;  %v449_v59 = vadd.f32 %v448_v5, %v447_v46 }
  0x51   : > { %v573_v60 = vrot.slane %v572_v52, 2  ;;  %v458_v61 = vadd.f32 %v457_v55, %v456_v48  ;;  %v516_v48 = vld [vmem:[%s1228_s10] sm:$0x3] }
  0x52   : > { %v565_v63 = vadd.f32 %v564_v6, %v563_v51  ;;  %974 = vlog2.f32 %v449_v59 }
  0x53   : > { %v574_v12 = vadd.f32 %v573_v60, %v572_v52  ;;  %976 = vlog2.f32 %v458_v61 }
  0x54   : > { %v566_v4 = vrot.slane %v565_v63, 1 }
  0x55   : > { %v575_v7 = vrot.slane %v574_v12, 1 }
  0x56   : > { %v567_v11 = vadd.f32 %v566_v4, %v565_v63 }
  0x57   : > { %v576_v14 = vadd.f32 %v575_v7, %v574_v12 }
  0x58   : > { %978 = vlog2.f32 %v567_v11 }
  0x59   : > { %980 = vlog2.f32 %v576_v14 }
  0x5c   : > { %v975_v30 = vpop.eup %974 }
  0x5d   : > { %v977_v32 = vpop.eup %976  ;;  %v460_v16 = vmul.f32 0.6931472, %v975_v30 }
  0x5e   : > { %v462_v33 = vmul.f32 0.6931472, %v977_v32 }
  0x5f   : > { %v463_v50 = vadd.f32 %v460_v16, %v1311_v56 }
  0x60   : > { %v464_v36 = vadd.f32 %v462_v33, %v1313_v58 }
  0x61   : > { %v489_v22 = vsub.f32 %v463_v50, %v479_v21 }
  0x62   : > { %v979_v15 = vpop.eup %978  ;;  %v490_v37 = vsub.f32 %v464_v36, %v488_v34 }
  0x63   : > { %v981_v38 = vpop.eup %980  ;;  %v578_v40 = vmul.f32 0.6931472, %v979_v15 }
  0x64   : > { %v580_v19 = vmul.f32 0.6931472, %v981_v38  ;;  %v493_v41 = vcombine.low %v489_v22, %v490_v37 }
  0x65   : > { %v581_v42 = vadd.f32 %v578_v40, %v1328_v17 }
  0x66   : > { %v582_v56 = vadd.f32 %v580_v19, %v1338_v27  ;;  %v500_v58 = vrot.slane %v493_v41, %v1283_v24 }
  0x67   : > { %v607_v43 = vsub.f32 %v581_v42, %v597_v54 }
  0x68   : > { %v608_v44 = vsub.f32 %v582_v56, %v606_v39  ;;  %v507_v45 = vrot.slane %v500_v58, %v1283_v24 }
  0x6a   : > { %v611_v46 = vcombine.low %v607_v43, %v608_v44  ;;  %v509_v17 = vsel %vm1332_vm4, %v507_v45, 0.0 }
  0x6b   : > { %v510_v27 = vadd.f32 %v509_v17, %v397_v2 }
  0x6c   : > { %v618_v47 = vrot.slane %v611_v46, %v1283_v24 }
  0x6d   : > { %515 = vst.msk [vmem:[%s1234_s11] sm:$0x3] %vm1221_vm0, %v510_v27 }
  0x6e   : > { %v625_v49 = vrot.slane %v618_v47, %v1283_v24 }
  0x6f   : > { %995 = shalt.err (!%p992_p5)
}
  0x70   : > { %s996_s24 = scalar_lea.hbm %s1435_s29, 32  ;;  %s1000_s15 = scalar_lea.hbm %s1571_s3, 64 }
  0x71   : > { %p997_p6 = scmp.ne.s32.totalorder %s1435_s29, %s996_s24  ;;  %p1001_p10 = scmp.lt.u32.totalorder %s1435_s29, %s1571_s3 }
  0x72   : > { %p1002_p11 = scmp.lt.u32.totalorder %s1000_s15, %s996_s24  ;;  %p1004_p13 = scmp.lt.u32.totalorder %s996_s24, %s1435_s29 }
  0x73   : > { %p998_p7 = pnand %p997_p6, %p1200_p4 }
  0x74   : > { %p1003_p12 = por %p1002_p11, %p1001_p10 }
  0x75   : > { %p999_p9 = pneg %p998_p7 }
  0x76   : > { %p1005_p0 = por %p1004_p13, %p1003_p12 }
  0x78   : > { %p1006_p1 = pnand %p1005_p0, %p999_p9 }
  0x7a   : > { %1009 = shalt.err (!%p1006_p1)
}
  0x7b   : > { %882 = dma.vmem_to_hbm [thread:$0]  (%p1200_p4), %s1437_s16, 32, %s1435_s29, %s636_s12   ;;  %v627_v24 = vsel %vm1332_vm4, %v625_v49, 0.0 }
  0x7c   : > { %s688_s25 = sshll.u32 %s1241_s13, 4  ;;  %v628_v51 = vadd.f32 %v627_v24, %v516_v48  ;;  %s1480_s24 = scalar_lea.hbm %s1572_s4, %s1426_s9  ;;  %s1492_s25 = int_to_ptr.vmem [resolvable:$true] %s688_s25 }
  0x7d   : > { %s1490_s16 = scalar_lea.hbm %s1573_s5, %s1426_s9  ;;  %s641_s13 = scalar_lea.sflag [#allocation5], %s1445_s21 }
  0x7e   : > { %629 = vst.msk [vmem:[%s1228_s10] sm:$0x3] %vm1221_vm0, %v628_v51  ;;  %s1010_s29 = scalar_lea.vmem %s1484_s8, 32  ;;  %s1126_s12 = smov [#allocation4]  }
  0x7f   : > { %p1011_p2 = scmp.ne.s32.totalorder %s1484_s8, %s1010_s29  ;;  %s1014_s15 = sshll.u32 %s1126_s12, 4  ;;  %s1015_s15 = int_to_ptr.vmem [resolvable:$false] %s1014_s15 }
  0x80   : > { %s1016_s17 = scalar_lea.vmem %s1015_s15, 64  ;;  %p1017_p6 = scmp.lt.s32.totalorder %s1484_s8, %s1015_s15 }
  0x81   : > { %p1012_p3 = pnand %p1011_p2, %p1200_p4  ;;  %p1018_p7 = scmp.lt.s32.totalorder %s1016_s17, %s1010_s29 }
  0x83   : > { %p1013_p5 = pneg %p1012_p3  ;;  %p1019_p9 = por %p1018_p7, %p1017_p6 }
  0x85   : > { %p1020_p10 = pnand %p1019_p9, %p1013_p5 }
  0x87   : > { %1023 = shalt.err (!%p1020_p10)
}
  0x88   : > { %s1024_s10 = scalar_lea.hbm %s1480_s24, 32  ;;  %s1028_s27 = scalar_lea.hbm %s1572_s4, 64 }
  0x89   : > { %p1025_p11 = scmp.ne.s32.totalorder %s1480_s24, %s1024_s10  ;;  %p1029_p0 = scmp.lt.u32.totalorder %s1480_s24, %s1572_s4 }
  0x8a   : > { %p1030_p1 = scmp.lt.u32.totalorder %s1028_s27, %s1024_s10  ;;  %p1032_p3 = scmp.lt.u32.totalorder %s1024_s10, %s1480_s24 }
  0x8b   : > { %p1026_p12 = pnand %p1025_p11, %p1200_p4 }
  0x8c   : > { %p1031_p2 = por %p1030_p1, %p1029_p0 }
  0x8d   : > { %p1027_p13 = pneg %p1026_p12 }
  0x8e   : > { %p1033_p5 = por %p1032_p3, %p1031_p2 }
  0x90   : > { %p1034_p6 = pnand %p1033_p5, %p1027_p13 }
  0x92   : > { %1037 = shalt.err (!%p1034_p6)
}
  0x93   : > { %883 = dma.vmem_to_hbm [thread:$0]  (%p1200_p4), %s1484_s8, 32, %s1480_s24, %s641_s13  }
  0x94   : > { %s1038_s29 = scalar_lea.vmem %s1492_s25, 32  ;;  %s1127_s12 = smov [#allocation6]  }
  0x95   : > { %p1039_p7 = scmp.ne.s32.totalorder %s1492_s25, %s1038_s29  ;;  %s1042_s15 = sshll.u32 %s1127_s12, 4  ;;  %s1043_s15 = int_to_ptr.vmem [resolvable:$false] %s1042_s15 }
  0x96   : > { %s1044_s17 = scalar_lea.vmem %s1043_s15, 64  ;;  %p1045_p11 = scmp.lt.s32.totalorder %s1492_s25, %s1043_s15 }
  0x97   : > { %p1040_p9 = pnand %p1039_p7, %p1200_p4  ;;  %p1046_p12 = scmp.lt.s32.totalorder %s1044_s17, %s1038_s29 }
  0x99   : > { %p1041_p10 = pneg %p1040_p9  ;;  %p1047_p13 = por %p1046_p12, %p1045_p11 }
  0x9b   : > { %p1048_p0 = pnand %p1047_p13, %p1041_p10 }
  0x9d   : > { %1051 = shalt.err (!%p1048_p0)
}
  0x9e   : > { %s1052_s8 = scalar_lea.hbm %s1490_s16, 32  ;;  %s1056_s9 = scalar_lea.hbm %s1573_s5, 64 }
  0x9f   : > { %p1053_p1 = scmp.ne.s32.totalorder %s1490_s16, %s1052_s8  ;;  %p1057_p5 = scmp.lt.u32.totalorder %s1490_s16, %s1573_s5 }
  0xa0   : > { %p1058_p6 = scmp.lt.u32.totalorder %s1056_s9, %s1052_s8  ;;  %p1060_p9 = scmp.lt.u32.totalorder %s1052_s8, %s1490_s16 }
  0xa1   : > { %p1054_p2 = pnand %p1053_p1, %p1200_p4 }
  0xa2   : > { %p1059_p7 = por %p1058_p6, %p1057_p5 }
  0xa3   : > { %p1055_p3 = pneg %p1054_p2 }
  0xa4   : > { %p1061_p10 = por %p1060_p9, %p1059_p7 }
  0xa6   : > { %p1062_p11 = pnand %p1061_p10, %p1055_p3 }
  0xa8   : > { %1065 = shalt.err (!%p1062_p11)
}
  0xa9   : > { %884 = dma.vmem_to_hbm [thread:$0]  (%p1200_p4), %s1492_s25, 32, %s1490_s16, %s641_s13  }
  0xaa PF: > { %p898_p12 = scmp.ge.s32.totalorder %s1120_s23, 2  ;;  %s700_s7 = sand.u32 1, %s1100_s18  }
  0xab   : > { %s701_s11 = scalar_lea.sflag [#allocation3], %s700_s7 }
  0xac   : > { %p889_p13 = pnand %p898_p12, %p1209_p8 }
  0xae   : > { %1091 = dma.done.wait (!%p889_p13), %s701_s11, 32  }
  0xaf   : > { %1093 = vsyncadd (!%p889_p13), %s701_s11, 4294967264  ;;  %s1581_s29 = sadd.s32 4294967294, %s1120_s23  }
  0xb0   : > { %s709_s12 = sand.u32 1, %s1581_s29  }
  0xb1   : > { %s710_s28 = scalar_lea.sflag [#allocation5], %s709_s12 }
  0xb2   : > { %1095 = dma.done.wait (!%p889_p13), %s710_s28, 64  }
  0xb3   : > { %1097 = vsyncadd (!%p889_p13), %s710_s28, 4294967232  ;;  %s22_s23 = sadd.s32 1, %s1120_s23   ;;  %s1582_s18 = smov %s1104_s19 }
  0xb4   : > { %p19_p4 = scmp.ge.s32.totalorder %s22_s23, 4   ;;  %s1583_s19 = smov %s1108_s20 }
  0xb5   : > { %s1584_s20 = smov %s1215_s6  ;;  %s1585_s21 = smov %s1116_s22 }
  0xb6   : > { %s1586_s22 = smov %s1588_s26  ;;  %21 = sbr.rel (!%p19_p4) target bundleno = 6 (0x6), region = 109 }
  0xbd   :  { %724 = vsyncpa [#allocation3], 1 }
  0xbe   :  { %726 = vsyncpa [#allocation3 + $0x1], 1 }
  0xbf   :  { %727 = vsyncpa [#allocation5], 1 }
  0xc0   :  { %729 = vsyncpa [#allocation5 + $0x1], 1 }

</bundles_post_ra>
